<compile_context>
chip_gen: v5e
topology: v5e:2x2
jax: 0.10.0
libtpu: 0.0.40
codegen_flags: <defaults>
</compile_context>

<pallas_src>
import jax
import jax.numpy as jnp
from jax.experimental import pallas as pl
from jax.experimental.pallas import tpu as pltpu

INPUT_DIM = 28 * 28     # 784
HIDDEN_1 = 200
HIDDEN_2 = 200
OUTPUT_DIM = 10

# Lane-aligned (multiple of 128) padded dims.
INPUT_PAD = 896         # 7 * 128
HIDDEN_PAD = 256        # 2 * 128
OUTPUT_PAD = 128

TB_MAX = 512            # batch-tile rows per grid step


def _round_up(n, m):
    return (n + m - 1) // m * m


def _pad2d(a, rows, cols):
    r, c = a.shape
    return jnp.pad(a, ((0, rows - r), (0, cols - c)))


def _doodle_mlp_kernel(x_ref, w1_ref, b1_ref, w2_ref, b2_ref, w3_ref, b3_ref, o_ref):
    # Fully fused 3-layer MLP on one batch tile. Weights stay VMEM-resident
    # (constant index_map), matmuls run bf16 on the MXU with f32 accumulation,
    # bias add + ReLU stay in f32 on the VPU. Zero-padded rows/cols are
    # numerically inert (zero weights, zero biases).
    x = x_ref[...]                                                          # (TB, 896) bf16
    h1 = jnp.dot(x, w1_ref[...], preferred_element_type=jnp.float32) + b1_ref[...]
    h1 = jnp.maximum(h1, 0.0).astype(jnp.bfloat16)                          # (TB, 256)
    h2 = jnp.dot(h1, w2_ref[...], preferred_element_type=jnp.float32) + b2_ref[...]
    h2 = jnp.maximum(h2, 0.0).astype(jnp.bfloat16)                          # (TB, 256)
    out = jnp.dot(h2, w3_ref[...], preferred_element_type=jnp.float32) + b3_ref[...]
    o_ref[...] = out.astype(o_ref.dtype)                                    # (TB, 128) f32


def doodle_ann_forward(x, params):
    """x: any shape with 784 trailing elements per row (e.g. (B,1,28,28)).

    Returns (B, 10) f32 logits, matching DoodleANN.forward.
    """
    w1, b1, w2, b2, w3, b3 = params
    x2d = x.reshape(-1, INPUT_DIM).astype(jnp.float32)                      # x.view(-1, 784)
    batch = x2d.shape[0]

    # Pick batch tile: multiple of 16 (bf16 sublane packing), capped at TB_MAX,
    # and pad the batch so it divides evenly.
    b_pad = _round_up(max(batch, 1), 16)
    tb = min(TB_MAX, b_pad)
    b_pad = _round_up(b_pad, tb)
    grid = (b_pad // tb,)

    # Zero-pad to lane-aligned shapes; cast matmul operands to bf16.
    x_p = jnp.pad(x2d, ((0, b_pad - batch), (0, INPUT_PAD - INPUT_DIM))).astype(jnp.bfloat16)
    w1_p = _pad2d(w1, INPUT_PAD, HIDDEN_PAD).astype(jnp.bfloat16)
    w2_p = _pad2d(w2, HIDDEN_PAD, HIDDEN_PAD).astype(jnp.bfloat16)
    w3_p = _pad2d(w3, HIDDEN_PAD, OUTPUT_PAD).astype(jnp.bfloat16)
    b1_p = _pad2d(b1, 1, HIDDEN_PAD).astype(jnp.float32)
    b2_p = _pad2d(b2, 1, HIDDEN_PAD).astype(jnp.float32)
    b3_p = _pad2d(b3, 1, OUTPUT_PAD).astype(jnp.float32)

    const = lambda i: (0, 0)   # same block every step -> stays resident in VMEM

    out_padded = pl.pallas_call(
        _doodle_mlp_kernel,
        out_shape=jax.ShapeDtypeStruct((b_pad, OUTPUT_PAD), jnp.float32),
        grid=grid,
        in_specs=[
            pl.BlockSpec((tb, INPUT_PAD), lambda i: (i, 0)),        # x: streamed per tile
            pl.BlockSpec((INPUT_PAD, HIDDEN_PAD), const),           # W1
            pl.BlockSpec((1, HIDDEN_PAD), const),                   # b1
            pl.BlockSpec((HIDDEN_PAD, HIDDEN_PAD), const),          # W2
            pl.BlockSpec((1, HIDDEN_PAD), const),                   # b2
            pl.BlockSpec((HIDDEN_PAD, OUTPUT_PAD), const),          # W3
            pl.BlockSpec((1, OUTPUT_PAD), const),                   # b3
        ],
        out_specs=pl.BlockSpec((tb, OUTPUT_PAD), lambda i: (i, 0)),
        compiler_params=pltpu.CompilerParams(
            dimension_semantics=("parallel",),    # megacore sharding on v7x
            vmem_limit_bytes=48 << 20,            # explicit; fits v7x 64 MiB VMEM easily
        ),
    )(x_p, w1_p, b1_p, w2_p, b2_p, w3_p, b3_p)

    # Slice away batch padding and the padded output lanes.
    return out_padded[:batch, :OUTPUT_DIM]


def init_params(key):
    """Deterministic init mimicking nn.Linear default U(-1/sqrt(fan_in), +1/sqrt(fan_in))."""
    def linear(k, fan_in, fan_out):
        kw, kb = jax.random.split(k)
        bound = 1.0 / jnp.sqrt(fan_in)
        w = jax.random.uniform(kw, (fan_in, fan_out), jnp.float32, -bound, bound)  # (in, out)
        b = jax.random.uniform(kb, (1, fan_out), jnp.float32, -bound, bound)
        return w, b

    k1, k2, k3 = jax.random.split(key, 3)
    w1, b1 = linear(k1, INPUT_DIM, HIDDEN_1)
    w2, b2 = linear(k2, HIDDEN_1, HIDDEN_2)
    w3, b3 = linear(k3, HIDDEN_2, OUTPUT_DIM)
    return (w1, b1, w2, b2, w3, b3)


def reference_forward_bf16(x, params):
    """Pure-JAX reference with the same bf16 operand quantization as the kernel."""
    w1, b1, w2, b2, w3, b3 = params
    h = x.reshape(-1, INPUT_DIM).astype(jnp.bfloat16)
    h = jnp.maximum(
        jnp.dot(h, w1.astype(jnp.bfloat16), preferred_element_type=jnp.float32) + b1, 0.0
    ).astype(jnp.bfloat16)
    h = jnp.maximum(
        jnp.dot(h, w2.astype(jnp.bfloat16), preferred_element_type=jnp.float32) + b2, 0.0
    ).astype(jnp.bfloat16)
    return jnp.dot(h, w3.astype(jnp.bfloat16), preferred_element_type=jnp.float32) + b3


if __name__ == "__main__":
    key = jax.random.PRNGKey(0)
    kx, kp = jax.random.split(key)

    # Small batch of MNIST-like doodles, NCHW as the PyTorch module expects.
    x = jax.random.normal(kx, (2, 1, 28, 28), jnp.float32)
    params = init_params(kp)

    out = doodle_ann_forward(x, params)
    out = jax.block_until_ready(out)

    ref = reference_forward_bf16(x, params)
    assert out.shape == (2, OUTPUT_DIM), out.shape
    assert jnp.allclose(out, ref, atol=2e-2, rtol=2e-2), "mismatch vs bf16 reference"

    print("KERNEL_OK")
</pallas_src>

<mosaic_0001>
module attributes {stable_mosaic.version = 11 : i64} {
  func.func @_doodle_mlp_kernel(%arg0: i32, %arg1: memref<16x896xbf16, #tpu.memory_space<vmem>>, %arg2: memref<896x256xbf16, #tpu.memory_space<vmem>>, %arg3: memref<1x256xf32, #tpu.memory_space<vmem>>, %arg4: memref<256x256xbf16, #tpu.memory_space<vmem>>, %arg5: memref<1x256xf32, #tpu.memory_space<vmem>>, %arg6: memref<256x128xbf16, #tpu.memory_space<vmem>>, %arg7: memref<1x128xf32, #tpu.memory_space<vmem>>, %arg8: memref<16x128xf32, #tpu.memory_space<vmem>>) attributes {dimension_semantics = [#tpu.dimension_semantics<parallel>], iteration_bounds = array<i64: 1>, scalar_prefetch = 0 : i64, scratch_operands = 0 : i64, tpu.core_type = #tpu.core_type<tc>, window_params = [{transform_indices = @transform_0, window_bounds = array<i64: 16, 896>}, {pipeline_mode = #tpu.pipeline_mode<synchronous>, transform_indices = @transform_1, window_bounds = array<i64: 896, 256>}, {pipeline_mode = #tpu.pipeline_mode<synchronous>, transform_indices = @transform_2, window_bounds = array<i64: 1, 256>}, {pipeline_mode = #tpu.pipeline_mode<synchronous>, transform_indices = @transform_3, window_bounds = array<i64: 256, 256>}, {pipeline_mode = #tpu.pipeline_mode<synchronous>, transform_indices = @transform_4, window_bounds = array<i64: 1, 256>}, {pipeline_mode = #tpu.pipeline_mode<synchronous>, transform_indices = @transform_5, window_bounds = array<i64: 256, 128>}, {pipeline_mode = #tpu.pipeline_mode<synchronous>, transform_indices = @transform_6, window_bounds = array<i64: 1, 128>}, {transform_indices = @transform_7, window_bounds = array<i64: 16, 128>}]} {
    %c0 = arith.constant 0 : index
    %c0_0 = arith.constant 0 : index
    %0 = vector.load %arg1[%c0, %c0_0] : memref<16x896xbf16, #tpu.memory_space<vmem>>, vector<16x896xbf16>
    %c0_1 = arith.constant 0 : index
    %c0_2 = arith.constant 0 : index
    %1 = vector.load %arg2[%c0_1, %c0_2] : memref<896x256xbf16, #tpu.memory_space<vmem>>, vector<896x256xbf16>
    %cst = arith.constant dense<0.000000e+00> : vector<16x256xf32>
    %2 = tpu.matmul %0, %1, %cst {dimension_numbers = #tpu.dot_dimension_numbers<[1], [0], [0], [1], [0, 0, 1, 1], [], []>} : vector<16x896xbf16>, vector<896x256xbf16>, vector<16x256xf32> -> vector<16x256xf32>
    %c0_3 = arith.constant 0 : index
    %c0_4 = arith.constant 0 : index
    %3 = vector.load %arg3[%c0_3, %c0_4] : memref<1x256xf32, #tpu.memory_space<vmem>>, vector<1x256xf32>
    %4 = vector.broadcast %3 : vector<1x256xf32> to vector<16x256xf32>
    %5 = arith.addf %2, %4 : vector<16x256xf32>
    %cst_5 = arith.constant 0.000000e+00 : f32
    %6 = vector.broadcast %cst_5 : f32 to vector<16x256xf32>
    %7 = arith.maximumf %5, %6 : vector<16x256xf32>
    %8 = arith.truncf %7 : vector<16x256xf32> to vector<16x256xbf16>
    %c0_6 = arith.constant 0 : index
    %c0_7 = arith.constant 0 : index
    %9 = vector.load %arg4[%c0_6, %c0_7] : memref<256x256xbf16, #tpu.memory_space<vmem>>, vector<256x256xbf16>
    %cst_8 = arith.constant dense<0.000000e+00> : vector<16x256xf32>
    %10 = tpu.matmul %8, %9, %cst_8 {dimension_numbers = #tpu.dot_dimension_numbers<[1], [0], [0], [1], [0, 0, 1, 1], [], []>} : vector<16x256xbf16>, vector<256x256xbf16>, vector<16x256xf32> -> vector<16x256xf32>
    %c0_9 = arith.constant 0 : index
    %c0_10 = arith.constant 0 : index
    %11 = vector.load %arg5[%c0_9, %c0_10] : memref<1x256xf32, #tpu.memory_space<vmem>>, vector<1x256xf32>
    %12 = vector.broadcast %11 : vector<1x256xf32> to vector<16x256xf32>
    %13 = arith.addf %10, %12 : vector<16x256xf32>
    %cst_11 = arith.constant 0.000000e+00 : f32
    %14 = vector.broadcast %cst_11 : f32 to vector<16x256xf32>
    %15 = arith.maximumf %13, %14 : vector<16x256xf32>
    %16 = arith.truncf %15 : vector<16x256xf32> to vector<16x256xbf16>
    %c0_12 = arith.constant 0 : index
    %c0_13 = arith.constant 0 : index
    %17 = vector.load %arg6[%c0_12, %c0_13] : memref<256x128xbf16, #tpu.memory_space<vmem>>, vector<256x128xbf16>
    %cst_14 = arith.constant dense<0.000000e+00> : vector<16x128xf32>
    %18 = tpu.matmul %16, %17, %cst_14 {dimension_numbers = #tpu.dot_dimension_numbers<[1], [0], [0], [1], [0, 0, 1, 1], [], []>} : vector<16x256xbf16>, vector<256x128xbf16>, vector<16x128xf32> -> vector<16x128xf32>
    %c0_15 = arith.constant 0 : index
    %c0_16 = arith.constant 0 : index
    %19 = vector.load %arg7[%c0_15, %c0_16] : memref<1x128xf32, #tpu.memory_space<vmem>>, vector<1x128xf32>
    %20 = vector.broadcast %19 : vector<1x128xf32> to vector<16x128xf32>
    %21 = arith.addf %18, %20 : vector<16x128xf32>
    %c0_17 = arith.constant 0 : index
    %c0_18 = arith.constant 0 : index
    %22 = vector.load %arg8[%c0_17, %c0_18] : memref<16x128xf32, #tpu.memory_space<vmem>>, vector<16x128xf32>
    tpu.vector_store %arg8[%c0_17, %c0_18], %21 {strides = array<i32>} : memref<16x128xf32, #tpu.memory_space<vmem>>, vector<16x128xf32>,
    return
  }
  func.func @transform_0(%arg0: i32) -> (i32, i32) {
    %c0_i32 = arith.constant 0 : i32
    %c0_i32_0 = arith.constant 0 : i32
    return %arg0, %c0_i32 : i32, i32
  }
  func.func @transform_1(%arg0: i32) -> (i32, i32) {
    %c0_i32 = arith.constant 0 : i32
    %c0_i32_0 = arith.constant 0 : i32
    %c0_i32_1 = arith.constant 0 : i32
    return %c0_i32, %c0_i32_0 : i32, i32
  }
  func.func @transform_2(%arg0: i32) -> (i32, i32) {
    %c0_i32 = arith.constant 0 : i32
    %c0_i32_0 = arith.constant 0 : i32
    %c0_i32_1 = arith.constant 0 : i32
    return %c0_i32, %c0_i32_0 : i32, i32
  }
  func.func @transform_3(%arg0: i32) -> (i32, i32) {
    %c0_i32 = arith.constant 0 : i32
    %c0_i32_0 = arith.constant 0 : i32
    %c0_i32_1 = arith.constant 0 : i32
    return %c0_i32, %c0_i32_0 : i32, i32
  }
  func.func @transform_4(%arg0: i32) -> (i32, i32) {
    %c0_i32 = arith.constant 0 : i32
    %c0_i32_0 = arith.constant 0 : i32
    %c0_i32_1 = arith.constant 0 : i32
    return %c0_i32, %c0_i32_0 : i32, i32
  }
  func.func @transform_5(%arg0: i32) -> (i32, i32) {
    %c0_i32 = arith.constant 0 : i32
    %c0_i32_0 = arith.constant 0 : i32
    %c0_i32_1 = arith.constant 0 : i32
    return %c0_i32, %c0_i32_0 : i32, i32
  }
  func.func @transform_6(%arg0: i32) -> (i32, i32) {
    %c0_i32 = arith.constant 0 : i32
    %c0_i32_0 = arith.constant 0 : i32
    %c0_i32_1 = arith.constant 0 : i32
    return %c0_i32, %c0_i32_0 : i32, i32
  }
  func.func @transform_7(%arg0: i32) -> (i32, i32) {
    %c0_i32 = arith.constant 0 : i32
    %c0_i32_0 = arith.constant 0 : i32
    return %arg0, %c0_i32 : i32, i32
  }
}

</mosaic_0001>

<bundles_post_ra>
// kernel: tpu_custom_call.1
= control target key start
LH: loop header
LB: loop body
LE: loop exit
PB: predicated region body
PF: predicated region fallthrough
CT: control target
= control target key end

     0   :  { %12 = vsyncpa [#allocation3], 0  ;;  %s2587_s0 = inlined_call_operand.hbm [shape: bf16[16,896], index: 0, kind: input, shape index: {}]   ;;  %s2588_s1 = inlined_call_operand.hbm [shape: bf16[896,256], index: 1, kind: input, shape index: {}]   ;;  %s2589_s2 = inlined_call_operand.hbm [shape: f32[1,256], index: 2, kind: input, shape index: {}]   ;;  %s2590_s3 = inlined_call_operand.hbm [shape: bf16[256,256], index: 3, kind: input, shape index: {}]   ;;  %s2591_s4 = inlined_call_operand.vmem [shape: f32[1,256], index: 4, kind: input, shape index: {}]   ;;  %s2592_s5 = inlined_call_operand.hbm [shape: bf16[256,128], index: 5, kind: input, shape index: {}]   ;;  %s2593_s6 = inlined_call_operand.vmem [shape: f32[1,128], index: 6, kind: input, shape index: {}]   ;;  %s2594_s7 = inlined_call_operand.hbm [shape: f32[16,128], index: 7, kind: output, shape index: {}]  }
   0x1   :  { %13 = vsyncpa [#allocation6], 0 }
   0x2   :  { %14 = vsyncpa [#allocation9], 0  ;;  %s33_s26 = sshll.u32 %s2588_s1, 4  ;;  %s34_s26 = int_to_ptr.hbm [resolvable:$true] %s33_s26 }
   0x3   :  { %15 = vsyncpa [#allocation4], 0  ;;  %s2470_s27 = smov [#allocation5]   ;;  %s57_s8 = sshll.u32 %s2590_s3, 4  ;;  %s58_s8 = int_to_ptr.hbm [resolvable:$true] %s57_s8 }
   0x4   :  { %s35_s28 = sshll.u32 %s2470_s27, 4  ;;  %s2471_s9 = smov 128   ;;  %s36_s28 = int_to_ptr.vmem [resolvable:$true] %s35_s28 }
   0x5   :  { %s2472_s10 = smov 8   ;;  %s2473_s11 = smov [#allocation8]  }
   0x6   :  { %41 = dma.hbm_to_vmem [thread:$0]  %s34_s26, 14336, %s36_s28, [#allocation6], %s2471_s9, %s2471_s9, %s2472_s10  }
   0x7   :  { %s59_s12 = sshll.u32 %s2473_s11, 4  ;;  %s20_s14 = sshll.u32 %s2587_s0, 4  ;;  %s60_s12 = int_to_ptr.vmem [resolvable:$true] %s59_s12  ;;  %s21_s14 = int_to_ptr.hbm [resolvable:$true] %s20_s14 }
   0x8   :  { %65 = dma.hbm_to_vmem [thread:$0]  %s58_s8, 4096, %s60_s12, [#allocation9], %s2471_s9, %s2471_s9, %s2472_s10  }
   0x9   :  { %s2474_s3 = smov [#allocation2]   ;;  %s47_s18 = sshll.u32 %s2589_s2, 4  ;;  %s48_s18 = int_to_ptr.hbm [resolvable:$true] %s47_s18 }
   0xa   :  { %s22_s15 = sshll.u32 %s2474_s3, 4  ;;  %s2475_s19 = smov 448   ;;  %s23_s15 = int_to_ptr.vmem [resolvable:$true] %s22_s15 }
   0xb   :  { %s2476_s20 = smov 28   ;;  %s2477_s21 = smov [#allocation7]  }
   0xc   :  { %28 = dma.hbm_to_vmem [thread:$0]  %s21_s14, 896, %s23_s15, [#allocation3], %s2475_s19, %s2475_s19, %s2476_s20  }
   0xd   :  { %s49_s22 = sshll.u32 %s2477_s21, 4  ;;  %s72_s24 = sshll.u32 %s2592_s5, 4  ;;  %s50_s22 = int_to_ptr.vmem [resolvable:$true] %s49_s22  ;;  %s73_s24 = int_to_ptr.hbm [resolvable:$true] %s72_s24 }
   0xe   :  { %52 = dma.hbm_to_vmem [thread:$0]  %s48_s18, 32, %s50_s22, [#allocation6]  }
   0xf   :  { %s2478_s25 = smov [#allocation10]   ;;  %s2479_s27 = smov 64  }
  0x10   :  { %s74_s26 = sshll.u32 %s2478_s25, 4  ;;  %s2480_s28 = smov 4   ;;  %s75_s26 = int_to_ptr.vmem [resolvable:$true] %s74_s26 }
  0x11   :  { %80 = dma.hbm_to_vmem [thread:$0]  %s73_s24, 2048, %s75_s26, [#allocation9], %s2479_s27, %s2479_s27, %s2480_s28  }
  0x12   :  { %2462 = dma.done.wait [#allocation3], 896  }
  0x13   :  { %2463 = vsyncadd [#allocation3], 4294966400 }
  0x14   :  { %2464 = dma.done.wait [#allocation6], 14368  }
  0x15   :  { %2465 = vsyncadd [#allocation6], 4294952928 }
  0x16   :  { %2466 = dma.done.wait [#allocation9], 6144  }
  0x17   :  { %2467 = vsyncadd [#allocation9], 4294961152  ;;  %v1556_v0 = vld [vmem:[#allocation5 + $0x70] sm:$0xf]  ;;  %v2160_v1 = vld [vmem:[#allocation5 + $0x74] sm:$0xf0] }
  0x18   :  { %v1620_v2 = vld [vmem:[#allocation5 + $0xf0] sm:$0xf]  ;;  %v1557_v3 = vor.u32 %v2160_v1, %v1556_v0  ;;  %v2176_v4 = vld [vmem:[#allocation5 + $0xf4] sm:$0xf0]  ;;  %v1548_v9 = vld [vmem:[#allocation5 + $0x60] sm:$0xf] }
  0x19   :  { %v1684_v5 = vld [vmem:[#allocation5 + $0x170] sm:$0xf]  ;;  %v2192_v6 = vld [vmem:[#allocation5 + $0x174] sm:$0xf0]  ;;  %v1621_v7 = vor.u32 %v2176_v4, %v1620_v2  ;;  %v2158_v10 = vld [vmem:[#allocation5 + $0x64] sm:$0xf0] }
  0x1a   :  { %v1685_v8 = vor.u32 %v2192_v6, %v1684_v5  ;;  %v1612_v11 = vld [vmem:[#allocation5 + $0xe0] sm:$0xf]  ;;  %825 = vmatpush.bf16.msra.mxu0 %v1557_v3  ;;  %v1549_v12 = vor.u32 %v2158_v10, %v1548_v9  ;;  %v2174_v13 = vld [vmem:[#allocation5 + $0xe4] sm:$0xf0]  ;;  %v1748_v18 = vld [vmem:[#allocation5 + $0x1f0] sm:$0xf] }
  0x1b   :  { %v1676_v14 = vld [vmem:[#allocation5 + $0x160] sm:$0xf]  ;;  %v2190_v15 = vld [vmem:[#allocation5 + $0x164] sm:$0xf0]  ;;  %839 = vmatpush.bf16.msra.mxu1 %v1621_v7  ;;  %v1613_v16 = vor.u32 %v2174_v13, %v1612_v11  ;;  %v2208_v19 = vld [vmem:[#allocation5 + $0x1f4] sm:$0xf0] }
  0x1c   :  { %853 = vmatpush.bf16.msra.mxu2 %v1685_v8  ;;  %v1677_v17 = vor.u32 %v2190_v15, %v1676_v14  ;;  %v1540_v20 = vld [vmem:[#allocation5 + $0x50] sm:$0xf]  ;;  %v1749_v21 = vor.u32 %v2208_v19, %v1748_v18  ;;  %v2156_v22 = vld [vmem:[#allocation5 + $0x54] sm:$0xf0]  ;;  %v1740_v27 = vld [vmem:[#allocation5 + $0x1e0] sm:$0xf] }
  0x1d   :  { %v1604_v23 = vld [vmem:[#allocation5 + $0xd0] sm:$0xf]  ;;  %v2172_v24 = vld [vmem:[#allocation5 + $0xd4] sm:$0xf0]  ;;  %v1541_v28 = vor.u32 %v2156_v22, %v1540_v20  ;;  %v2206_v29 = vld [vmem:[#allocation5 + $0x1e4] sm:$0xf0] }
  0x1e   :  { %v1668_v25 = vld [vmem:[#allocation5 + $0x150] sm:$0xf]  ;;  %v2188_v26 = vld [vmem:[#allocation5 + $0x154] sm:$0xf0]  ;;  %826 = vmatpush.bf16.msra.mxu0 %v1549_v12  ;;  %867 = vmatpush.bf16.msra.mxu3 %v1749_v21  ;;  %v1532_v30 = vld [vmem:[#allocation5 + $0x40] sm:$0xf]  ;;  %v1605_v32 = vor.u32 %v2172_v24, %v1604_v23  ;;  %v1741_v34 = vor.u32 %v2206_v29, %v1740_v27 }
  0x1f   :  { %v2154_v31 = vld [vmem:[#allocation5 + $0x44] sm:$0xf0]  ;;  %840 = vmatpush.bf16.msra.mxu1 %v1613_v16  ;;  %v1669_v33 = vor.u32 %v2188_v26, %v1668_v25  ;;  %v1596_v35 = vld [vmem:[#allocation5 + $0xc0] sm:$0xf]  ;;  %v1732_v39 = vld [vmem:[#allocation5 + $0x1d0] sm:$0xf] }
  0x20   :  { %854 = vmatpush.bf16.msra.mxu2 %v1677_v17  ;;  %v2170_v36 = vld [vmem:[#allocation5 + $0xc4] sm:$0xf0]  ;;  %v1660_v37 = vld [vmem:[#allocation5 + $0x140] sm:$0xf]  ;;  %v2204_v40 = vld [vmem:[#allocation5 + $0x1d4] sm:$0xf0]  ;;  %v1533_v41 = vor.u32 %v2154_v31, %v1532_v30 }
  0x21   :  { %v2186_v38 = vld [vmem:[#allocation5 + $0x144] sm:$0xf0]  ;;  %v1733_v42 = vor.u32 %v2204_v40, %v1732_v39  ;;  %v1524_v43 = vld [vmem:[#allocation5 + $0x30] sm:$0xf]  ;;  %v2152_v44 = vld [vmem:[#allocation5 + $0x34] sm:$0xf0]  ;;  %v1597_v45 = vor.u32 %v2170_v36, %v1596_v35 }
  0x22   :  { %827 = vmatpush.bf16.msra.mxu0 %v1541_v28  ;;  %868 = vmatpush.bf16.msra.mxu3 %v1741_v34  ;;  %v1661_v46 = vor.u32 %v2186_v38, %v1660_v37  ;;  %v1588_v47 = vld [vmem:[#allocation5 + $0xb0] sm:$0xf]  ;;  %v1724_v48 = vld [vmem:[#allocation5 + $0x1c0] sm:$0xf]  ;;  %v2202_v49 = vld [vmem:[#allocation5 + $0x1c4] sm:$0xf0]  ;;  %v1525_v53 = vor.u32 %v2152_v44, %v1524_v43 }
  0x23   :  { %841 = vmatpush.bf16.msra.mxu1 %v1605_v32  ;;  %v2168_v50 = vld [vmem:[#allocation5 + $0xb4] sm:$0xf0]  ;;  %v1652_v51 = vld [vmem:[#allocation5 + $0x130] sm:$0xf]  ;;  %v1725_v54 = vor.u32 %v2202_v49, %v1724_v48  ;;  %v1516_v55 = vld [vmem:[#allocation5 + $0x20] sm:$0xf] }
  0x24   :  { %855 = vmatpush.bf16.msra.mxu2 %v1669_v33  ;;  %v2184_v52 = vld [vmem:[#allocation5 + $0x134] sm:$0xf0]  ;;  %v2150_v56 = vld [vmem:[#allocation5 + $0x24] sm:$0xf0]  ;;  %v1589_v57 = vor.u32 %v2168_v50, %v1588_v47  ;;  %v1580_v59 = vld [vmem:[#allocation5 + $0xa0] sm:$0xf] }
  0x25   :  { %v1653_v58 = vor.u32 %v2184_v52, %v1652_v51  ;;  %v1716_v60 = vld [vmem:[#allocation5 + $0x1b0] sm:$0xf]  ;;  %v2200_v61 = vld [vmem:[#allocation5 + $0x1b4] sm:$0xf0]  ;;  %v2166_v62 = vld [vmem:[#allocation5 + $0xa4] sm:$0xf0]  ;;  %v1517_v1 = vor.u32 %v2150_v56, %v1516_v55 }
  0x26   :  { %828 = vmatpush.bf16.msra.mxu0 %v1533_v41  ;;  %869 = vmatpush.bf16.msra.mxu3 %v1733_v42  ;;  %v1644_v63 = vld [vmem:[#allocation5 + $0x120] sm:$0xf]  ;;  %v2182_v0 = vld [vmem:[#allocation5 + $0x124] sm:$0xf0]  ;;  %v1717_v2 = vor.u32 %v2200_v61, %v1716_v60  ;;  %v1508_v3 = vld [vmem:[#allocation5 + $0x10] sm:$0xf]  ;;  %v1581_v5 = vor.u32 %v2166_v62, %v1580_v59 }
  0x27   :  { %842 = vmatpush.bf16.msra.mxu1 %v1597_v45  ;;  %v2148_v4 = vld [vmem:[#allocation5 + $0x14] sm:$0xf0]  ;;  %v1645_v6 = vor.u32 %v2182_v0, %v1644_v63  ;;  %v1572_v7 = vld [vmem:[#allocation5 + $0x90] sm:$0xf]  ;;  %v1708_v8 = vld [vmem:[#allocation5 + $0x1a0] sm:$0xf] }
  0x28   :  { %856 = vmatpush.bf16.msra.mxu2 %v1661_v46  ;;  %v2198_v9 = vld [vmem:[#allocation5 + $0x1a4] sm:$0xf0]  ;;  %v2164_v10 = vld [vmem:[#allocation5 + $0x94] sm:$0xf0]  ;;  %v1636_v11 = vld [vmem:[#allocation5 + $0x110] sm:$0xf]  ;;  %v1509_v13 = vor.u32 %v2148_v4, %v1508_v3 }
  0x29   :  { %v2180_v12 = vld [vmem:[#allocation5 + $0x114] sm:$0xf0]  ;;  %v1709_v14 = vor.u32 %v2198_v9, %v1708_v8  ;;  %v1500_v15 = vld [vmem:[#allocation5] sm:$0xf]  ;;  %v2146_v16 = vld [vmem:[#allocation5 + $0x4] sm:$0xf0]  ;;  %v1573_v18 = vor.u32 %v2164_v10, %v1572_v7 }
  0x2a   :  { %829 = vmatpush.bf16.msra.mxu0 %v1525_v53  ;;  %870 = vmatpush.bf16.msra.mxu3 %v1725_v54  ;;  %v1564_v17 = vld [vmem:[#allocation5 + $0x80] sm:$0xf]  ;;  %v1637_v19 = vor.u32 %v2180_v12, %v1636_v11  ;;  %v2162_v20 = vld [vmem:[#allocation5 + $0x84] sm:$0xf0]  ;;  %v1700_v21 = vld [vmem:[#allocation5 + $0x190] sm:$0xf]  ;;  %v1501_v29 = vor.u32 %v2146_v16, %v1500_v15 }
  0x2b   :  { %843 = vmatpush.bf16.msra.mxu1 %v1589_v57  ;;  %v2196_v22 = vld [vmem:[#allocation5 + $0x194] sm:$0xf0]  ;;  %v1628_v23 = vld [vmem:[#allocation5 + $0x100] sm:$0xf]  ;;  %v2178_v24 = vld [vmem:[#allocation5 + $0x104] sm:$0xf0]  ;;  %v1565_v33 = vor.u32 %v2162_v20, %v1564_v17 }
  0x2c   :  { %857 = vmatpush.bf16.msra.mxu2 %v1653_v58  ;;  %v1812_v25 = vld [vmem:[#allocation5 + $0x270] sm:$0xf]  ;;  %v2224_v26 = vld [vmem:[#allocation5 + $0x274] sm:$0xf0]  ;;  %v1701_v30 = vor.u32 %v2196_v22, %v1700_v21  ;;  %v1629_v34 = vor.u32 %v2178_v24, %v1628_v23  ;;  %v1692_v35 = vld [vmem:[#allocation5 + $0x180] sm:$0xf] }
  0x2d   :  { %v1876_v27 = vld [vmem:[#allocation5 + $0x2f0] sm:$0xf]  ;;  %v2240_v28 = vld [vmem:[#allocation5 + $0x2f4] sm:$0xf0]  ;;  %v2194_v36 = vld [vmem:[#allocation5 + $0x184] sm:$0xf0]  ;;  %v1813_v38 = vor.u32 %v2224_v26, %v1812_v25 }
  0x2e   :  { %830 = vmatpush.bf16.msra.mxu0 %v1517_v1  ;;  %871 = vmatpush.bf16.msra.mxu3 %v1717_v2  ;;  %v1940_v31 = vld [vmem:[#allocation5 + $0x370] sm:$0xf]  ;;  %v2256_v32 = vld [vmem:[#allocation5 + $0x374] sm:$0xf0]  ;;  %v1804_v37 = vld [vmem:[#allocation5 + $0x260] sm:$0xf]  ;;  %v1877_v39 = vor.u32 %v2240_v28, %v1876_v27  ;;  %v1693_v47 = vor.u32 %v2194_v36, %v1692_v35 }
  0x2f   :  { %844 = vmatpush.bf16.msra.mxu1 %v1581_v5  ;;  %v2222_v40 = vld [vmem:[#allocation5 + $0x264] sm:$0xf0]  ;;  %v2159_v41 = vld [vmem:[#allocation5 + $0x74] sm:$0xf]  ;;  %v1558_v42 = vld [vmem:[#allocation5 + $0x78] sm:$0xf0]  ;;  %v1941_v43 = vor.u32 %v2256_v32, %v1940_v31 }
  0x30   :  { %858 = vmatpush.bf16.msra.mxu2 %v1645_v6  ;;  %v1868_v44 = vld [vmem:[#allocation5 + $0x2e0] sm:$0xf]  ;;  %v2238_v45 = vld [vmem:[#allocation5 + $0x2e4] sm:$0xf0]  ;;  %v2141_v50 = vld [vmem:[#allocation2 + $0x18] sm:$0xf0]  ;;  %v1561_v51 = vor.u32 %v2159_v41, %v1558_v42  ;;  %v1805_v56 = vor.u32 %v2222_v40, %v1804_v37 }
  0x31   :  { %v1932_v46 = vld [vmem:[#allocation5 + $0x360] sm:$0xf]  ;;  %v2254_v48 = vld [vmem:[#allocation5 + $0x364] sm:$0xf0]  ;;  %v1796_v52 = vld [vmem:[#allocation5 + $0x250] sm:$0xf]  ;;  %v1869_v57 = vor.u32 %v2238_v45, %v1868_v44 }
  0x32   :  { %831 = vmatpush.bf16.msra.mxu0 %v1509_v13  ;;  %872 = vmatpush.bf16.msra.mxu3 %v1709_v14  ;;  %v1472_v49 = vld [vmem:[#allocation2] sm:$0xf]  ;;  %v1480_v54 = vld [vmem:[#allocation2 + $0x8] sm:$0xf]  ;;  %v2142_v55 = vld [vmem:[#allocation2 + $0x20] sm:$0xf0]  ;;  %v1933_v62 = vor.u32 %v2254_v48, %v1932_v46 }
  0x33   :  { %845 = vmatpush.bf16.msra.mxu1 %v1573_v18  ;;  %v2543_v53 = vor.u32 %v2141_v50, %v1472_v49  ;;  %v2220_v58 = vld [vmem:[#allocation5 + $0x254] sm:$0xf0]  ;;  %v2157_v59 = vld [vmem:[#allocation5 + $0x64] sm:$0xf]  ;;  %v1550_v60 = vld [vmem:[#allocation5 + $0x68] sm:$0xf0]  ;;  %v2545_v61 = vor.u32 %v2142_v55, %v1480_v54 }
  0x34   :  { %859 = vmatpush.bf16.msra.mxu2 %v1637_v19  ;;  %v1860_v63 = vld [vmem:[#allocation5 + $0x2d0] sm:$0xf]  ;;  %v2236_v0 = vld [vmem:[#allocation5 + $0x2d4] sm:$0xf0]  ;;  %v2138_v1 = vld [vmem:[#allocation2 + $0x4] sm:$0xf]  ;;  %v1553_v5 = vor.u32 %v2157_v59, %v1550_v60  ;;  %v1797_v9 = vor.u32 %v2220_v58, %v1796_v52 }
  0x35   :  { %v1924_v2 = vld [vmem:[#allocation5 + $0x350] sm:$0xf]  ;;  %v2252_v3 = vld [vmem:[#allocation5 + $0x354] sm:$0xf0]  ;;  %v1474_v4 = vld [vmem:[#allocation2 + $0x1c] sm:$0xf0]  ;;  %v1861_v10 = vor.u32 %v2236_v0, %v1860_v63 }
  0x36   :  { %832 = vmatpush.bf16.msra.mxu0 %v1501_v29  ;;  %873 = vmatpush.bf16.msra.mxu3 %v1701_v30  ;;  %v1788_v6 = vld [vmem:[#allocation5 + $0x240] sm:$0xf]  ;;  %v2218_v7 = vld [vmem:[#allocation5 + $0x244] sm:$0xf0]  ;;  %v2549_v8 = vor.u32 %v2138_v1, %v1474_v4  ;;  %v2155_v12 = vld [vmem:[#allocation5 + $0x54] sm:$0xf]  ;;  %v1925_v14 = vor.u32 %v2252_v3, %v1924_v2 }
  0x37   :  { %846 = vmatpush.bf16.msra.mxu1 %v1565_v33  ;;  %v1852_v11 = vld [vmem:[#allocation5 + $0x2c0] sm:$0xf]  ;;  %v1542_v13 = vld [vmem:[#allocation5 + $0x58] sm:$0xf0]  ;;  %v2234_v15 = vld [vmem:[#allocation5 + $0x2c4] sm:$0xf0]  ;;  %v1789_v22 = vor.u32 %v2218_v7, %v1788_v6 }
  0x38   :  { %860 = vmatpush.bf16.msra.mxu2 %v1629_v34  ;;  %v2139_v16 = vld [vmem:[#allocation2 + $0xc] sm:$0xf]  ;;  %v1482_v17 = vld [vmem:[#allocation2 + $0x24] sm:$0xf0]  ;;  %v1916_v18 = vld [vmem:[#allocation5 + $0x340] sm:$0xf]  ;;  %v1545_v21 = vor.u32 %v2155_v12, %v1542_v13  ;;  %v1853_v23 = vor.u32 %v2234_v15, %v1852_v11 }
  0x39   :  { %833 = vmatmul.bf16.vlgmr.msra.gmra.mxu0 %v2543_v53  ;;  %v2250_v19 = vld [vmem:[#allocation5 + $0x344] sm:$0xf0]  ;;  %v2552_v20 = vor.u32 %v2139_v16, %v1482_v17  ;;  %v1780_v24 = vld [vmem:[#allocation5 + $0x230] sm:$0xf]  ;;  %v2153_v25 = vld [vmem:[#allocation5 + $0x44] sm:$0xf] }
  0x3a   :  { %881 = vmatpush.bf16.msrb.mxu0 %v1813_v38  ;;  %874 = vmatpush.bf16.msra.mxu3 %v1693_v47  ;;  %v1534_v26 = vld [vmem:[#allocation5 + $0x48] sm:$0xf0]  ;;  %v1917_v27 = vor.u32 %v2250_v19, %v1916_v18  ;;  %v2216_v28 = vld [vmem:[#allocation5 + $0x234] sm:$0xf0]  ;;  %v1844_v29 = vld [vmem:[#allocation5 + $0x2b0] sm:$0xf] }
  0x3b   :  { %895 = vmatpush.bf16.msrb.mxu1 %v1877_v39  ;;  %861 = vmatmul.bf16.vlgmr.msra.gmra.mxu2 %v2545_v61  ;;  %v2232_v30 = vld [vmem:[#allocation5 + $0x2b4] sm:$0xf0]  ;;  %v1908_v31 = vld [vmem:[#allocation5 + $0x330] sm:$0xf]  ;;  %v1537_v33 = vor.u32 %v2153_v25, %v1534_v26  ;;  %v1781_v34 = vor.u32 %v2216_v28, %v1780_v24  ;;  %v1772_v36 = vld [vmem:[#allocation5 + $0x220] sm:$0xf] }
  0x3c   :  { %909 = vmatpush.bf16.msrb.mxu2 %v1941_v43  ;;  %847 = vmatmul.bf16.vlgmr.msra.gmra.mxu1 %v2549_v8  ;;  %v2248_v32 = vld [vmem:[#allocation5 + $0x334] sm:$0xf0]  ;;  %v1845_v35 = vor.u32 %v2232_v30, %v1844_v29  ;;  %v2151_v37 = vld [vmem:[#allocation5 + $0x34] sm:$0xf]  ;;  %v1526_v38 = vld [vmem:[#allocation5 + $0x38] sm:$0xf0] }
  0x3d   :  { %875 = vmatmul.bf16.vlgmr.msra.gmra.mxu3 %v2552_v20  ;;  %v1909_v39 = vor.u32 %v2248_v32, %v1908_v31  ;;  %v2214_v40 = vld [vmem:[#allocation5 + $0x224] sm:$0xf0]  ;;  %v1836_v41 = vld [vmem:[#allocation5 + $0x2a0] sm:$0xf]  ;;  %v1529_v45 = vor.u32 %v2151_v37, %v1526_v38  ;;  %v1764_v48 = vld [vmem:[#allocation5 + $0x210] sm:$0xf] }
  0x3e   :  { %923 = vmatpush.bf16.msrb.mxu3 %v1561_v51  ;;  %882 = vmatpush.bf16.msrb.mxu0 %v1805_v56  ;;  %v2230_v42 = vld [vmem:[#allocation5 + $0x2a4] sm:$0xf0]  ;;  %v1900_v43 = vld [vmem:[#allocation5 + $0x320] sm:$0xf]  ;;  %v1773_v46 = vor.u32 %v2214_v40, %v1772_v36  ;;  %v2149_v49 = vld [vmem:[#allocation5 + $0x24] sm:$0xf] }
  0x3f   :  { %896 = vmatpush.bf16.msrb.mxu1 %v1869_v57  ;;  %v2246_v44 = vld [vmem:[#allocation5 + $0x324] sm:$0xf0]  ;;  %v1837_v47 = vor.u32 %v2230_v42, %v1836_v41  ;;  %v1518_v50 = vld [vmem:[#allocation5 + $0x28] sm:$0xf0]  ;;  %v2212_v52 = vld [vmem:[#allocation5 + $0x214] sm:$0xf0] }
  0x40   :  { %910 = vmatpush.bf16.msrb.mxu2 %v1933_v62  ;;  %v1901_v51 = vor.u32 %v2246_v44, %v1900_v43  ;;  %v1828_v54 = vld [vmem:[#allocation5 + $0x290] sm:$0xf]  ;;  %v2228_v55 = vld [vmem:[#allocation5 + $0x294] sm:$0xf0]  ;;  %v1521_v58 = vor.u32 %v2149_v49, %v1518_v50  ;;  %v1756_v59 = vld [vmem:[#allocation5 + $0x200] sm:$0xf]  ;;  %v1765_v0 = vor.u32 %v2212_v52, %v1764_v48 }
  0x41   :  { %v1892_v56 = vld [vmem:[#allocation5 + $0x310] sm:$0xf]  ;;  %v2244_v57 = vld [vmem:[#allocation5 + $0x314] sm:$0xf0]  ;;  %v2210_v60 = vld [vmem:[#allocation5 + $0x204] sm:$0xf0]  ;;  %v1829_v1 = vor.u32 %v2228_v55, %v1828_v54 }
  0x42   :  { %924 = vmatpush.bf16.msrb.mxu3 %v1553_v5  ;;  %883 = vmatpush.bf16.msrb.mxu0 %v1797_v9  ;;  %v1820_v62 = vld [vmem:[#allocation5 + $0x280] sm:$0xf]  ;;  %v2226_v63 = vld [vmem:[#allocation5 + $0x284] sm:$0xf0]  ;;  %v2147_v4 = vld [vmem:[#allocation5 + $0x14] sm:$0xf]  ;;  %v1893_v6 = vor.u32 %v2244_v57, %v1892_v56  ;;  %v1757_v19 = vor.u32 %v2210_v60, %v1756_v59 }
  0x43   :  { %897 = vmatpush.bf16.msrb.mxu1 %v1861_v10  ;;  %v1884_v2 = vld [vmem:[#allocation5 + $0x300] sm:$0xf]  ;;  %v2242_v3 = vld [vmem:[#allocation5 + $0x304] sm:$0xf0]  ;;  %v1510_v5 = vld [vmem:[#allocation5 + $0x18] sm:$0xf0] }
  0x44   :  { %911 = vmatpush.bf16.msrb.mxu2 %v1925_v14  ;;  %v2175_v7 = vld [vmem:[#allocation5 + $0xf4] sm:$0xf]  ;;  %v1622_v9 = vld [vmem:[#allocation5 + $0xf8] sm:$0xf0]  ;;  %v1488_v12 = vld [vmem:[#allocation2 + $0x10] sm:$0xf]  ;;  %v1513_v14 = vor.u32 %v2147_v4, %v1510_v5  ;;  %v1885_v25 = vor.u32 %v2242_v3, %v1884_v2 }
  0x45   :  { %v2191_v10 = vld [vmem:[#allocation5 + $0x174] sm:$0xf]  ;;  %v1686_v11 = vld [vmem:[#allocation5 + $0x178] sm:$0xf0]  ;;  %v1496_v15 = vld [vmem:[#allocation2 + $0x18] sm:$0xf]  ;;  %v1625_v26 = vor.u32 %v2175_v7, %v1622_v9 }
  0x46   :  { %925 = vmatpush.bf16.msrb.mxu3 %v1545_v21  ;;  %884 = vmatpush.bf16.msrb.mxu0 %v1789_v22  ;;  %v2143_v13 = vld [vmem:[#allocation2 + $0x28] sm:$0xf0]  ;;  %v2144_v16 = vld [vmem:[#allocation2 + $0x30] sm:$0xf0]  ;;  %v1821_v21 = vor.u32 %v2226_v63, %v1820_v62  ;;  %v2145_v24 = vld [vmem:[#allocation5 + $0x4] sm:$0xf]  ;;  %v1689_v30 = vor.u32 %v2191_v10, %v1686_v11 }
  0x47   :  { %898 = vmatpush.bf16.msrb.mxu1 %v1853_v23  ;;  %v2207_v17 = vld [vmem:[#allocation5 + $0x1f4] sm:$0xf]  ;;  %v1750_v18 = vld [vmem:[#allocation5 + $0x1f8] sm:$0xf0]  ;;  %v1490_v23 = vld [vmem:[#allocation2 + $0x2c] sm:$0xf0]  ;;  %v2559_v40 = vor.u32 %v2144_v16, %v1496_v15 }
  0x48   :  { %912 = vmatpush.bf16.msrb.mxu2 %v1917_v27  ;;  %v2140_v22 = vld [vmem:[#allocation2 + $0x14] sm:$0xf]  ;;  %v1502_v27 = vld [vmem:[#allocation5 + $0x8] sm:$0xf0]  ;;  %v2173_v28 = vld [vmem:[#allocation5 + $0xe4] sm:$0xf]  ;;  %v1753_v31 = vor.u32 %v2207_v17, %v1750_v18 }
  0x49   :  { %v1614_v29 = vld [vmem:[#allocation5 + $0xe8] sm:$0xf0]  ;;  %v2189_v32 = vld [vmem:[#allocation5 + $0x164] sm:$0xf]  ;;  %v2557_v36 = vor.u32 %v2140_v22, %v1490_v23  ;;  %v1505_v41 = vor.u32 %v2145_v24, %v1502_v27  ;;  %v2171_v44 = vld [vmem:[#allocation5 + $0xd4] sm:$0xf] }
  0x4a   :  { %926 = vmatpush.bf16.msrb.mxu3 %v1537_v33  ;;  %885 = vmatpush.bf16.msrb.mxu0 %v1781_v34  ;;  %v2223_v33 = vld [vmem:[#allocation5 + $0x274] sm:$0xf]  ;;  %v1814_v34 = vld [vmem:[#allocation5 + $0x278] sm:$0xf0]  ;;  %v1678_v37 = vld [vmem:[#allocation5 + $0x168] sm:$0xf0]  ;;  %v1617_v42 = vor.u32 %v2173_v28, %v1614_v29 }
  0x4b   :  { %899 = vmatpush.bf16.msrb.mxu1 %v1845_v35  ;;  %v2555_v35 = vor.u32 %v2143_v13, %v1488_v12  ;;  %v2205_v38 = vld [vmem:[#allocation5 + $0x1e4] sm:$0xf]  ;;  %v1817_v43 = vor.u32 %v2223_v33, %v1814_v34  ;;  %v2187_v48 = vld [vmem:[#allocation5 + $0x154] sm:$0xf]  ;;  %v1806_v50 = vld [vmem:[#allocation5 + $0x268] sm:$0xf0] }
  0x4c   :  { %913 = vmatpush.bf16.msrb.mxu2 %v1909_v39  ;;  %v1742_v39 = vld [vmem:[#allocation5 + $0x1e8] sm:$0xf0]  ;;  %v2221_v49 = vld [vmem:[#allocation5 + $0x264] sm:$0xf]  ;;  %v2203_v52 = vld [vmem:[#allocation5 + $0x1d4] sm:$0xf] }
  0x4d   :  { %v1734_v54 = vld [vmem:[#allocation5 + $0x1d8] sm:$0xf0]  ;;  %v1809_v56 = vor.u32 %v2221_v49, %v1806_v50  ;;  %v2169_v57 = vld [vmem:[#allocation5 + $0xc4] sm:$0xf]  ;;  %v2219_v63 = vld [vmem:[#allocation5 + $0x254] sm:$0xf] }
  0x4e   :  { %927 = vmatpush.bf16.msrb.mxu3 %v1529_v45  ;;  %886 = vmatpush.bf16.msrb.mxu0 %v1773_v46  ;;  %v1606_v45 = vld [vmem:[#allocation5 + $0xd8] sm:$0xf0]  ;;  %v1681_v46 = vor.u32 %v2189_v32, %v1678_v37  ;;  %v1737_v60 = vor.u32 %v2203_v52, %v1734_v54  ;;  %v2185_v62 = vld [vmem:[#allocation5 + $0x144] sm:$0xf]  ;;  %v1726_v3 = vld [vmem:[#allocation5 + $0x1c8] sm:$0xf0] }
  0x4f   :  { %900 = vmatpush.bf16.msrb.mxu1 %v1837_v47  ;;  %v1745_v47 = vor.u32 %v2205_v38, %v1742_v39  ;;  %v1609_v55 = vor.u32 %v2171_v44, %v1606_v45  ;;  %v2201_v2 = vld [vmem:[#allocation5 + $0x1c4] sm:$0xf]  ;;  %v1590_v7 = vld [vmem:[#allocation5 + $0xb8] sm:$0xf0]  ;;  %v2183_v11 = vld [vmem:[#allocation5 + $0x134] sm:$0xf] }
  0x50   :  { %914 = vmatpush.bf16.msrb.mxu2 %v1901_v51  ;;  %v1670_v51 = vld [vmem:[#allocation5 + $0x158] sm:$0xf0]  ;;  %v1729_v10 = vor.u32 %v2201_v2, %v1726_v3  ;;  %v2217_v12 = vld [vmem:[#allocation5 + $0x244] sm:$0xf]  ;;  %v1790_v13 = vld [vmem:[#allocation5 + $0x248] sm:$0xf0] }
  0x51   :  { %v1673_v59 = vor.u32 %v2187_v48, %v1670_v51  ;;  %v2199_v15 = vld [vmem:[#allocation5 + $0x1b4] sm:$0xf]  ;;  %v1718_v16 = vld [vmem:[#allocation5 + $0x1b8] sm:$0xf0]  ;;  %v2165_v18 = vld [vmem:[#allocation5 + $0xa4] sm:$0xf] }
  0x52   :  { %928 = vmatpush.bf16.msrb.mxu3 %v1521_v58  ;;  %887 = vmatpush.bf16.msrb.mxu0 %v1765_v0  ;;  %v1598_v58 = vld [vmem:[#allocation5 + $0xc8] sm:$0xf0]  ;;  %v1798_v0 = vld [vmem:[#allocation5 + $0x258] sm:$0xf0]  ;;  %v1721_v23 = vor.u32 %v2199_v15, %v1718_v16  ;;  %v2215_v24 = vld [vmem:[#allocation5 + $0x234] sm:$0xf] }
  0x53   :  { %901 = vmatpush.bf16.msrb.mxu1 %v1829_v1  ;;  %v1662_v1 = vld [vmem:[#allocation5 + $0x148] sm:$0xf0]  ;;  %v1601_v4 = vor.u32 %v2169_v57, %v1598_v58  ;;  %v1801_v5 = vor.u32 %v2219_v63, %v1798_v0  ;;  %v2197_v27 = vld [vmem:[#allocation5 + $0x1a4] sm:$0xf]  ;;  %v1574_v32 = vld [vmem:[#allocation5 + $0x98] sm:$0xf0] }
  0x54   :  { %915 = vmatpush.bf16.msrb.mxu2 %v1893_v6  ;;  %v2167_v6 = vld [vmem:[#allocation5 + $0xb4] sm:$0xf]  ;;  %v1665_v9 = vor.u32 %v2185_v62, %v1662_v1  ;;  %v1710_v28 = vld [vmem:[#allocation5 + $0x1a8] sm:$0xf0]  ;;  %v2213_v38 = vld [vmem:[#allocation5 + $0x224] sm:$0xf] }
  0x55   :  { %v1593_v17 = vor.u32 %v2167_v6, %v1590_v7  ;;  %v1713_v34 = vor.u32 %v2197_v27, %v1710_v28  ;;  %v2179_v37 = vld [vmem:[#allocation5 + $0x114] sm:$0xf]  ;;  %v1774_v39 = vld [vmem:[#allocation5 + $0x228] sm:$0xf0]  ;;  %v2177_v48 = vld [vmem:[#allocation5 + $0x104] sm:$0xf] }
  0x56   :  { %929 = vmatpush.bf16.msrb.mxu3 %v1513_v14  ;;  %888 = vmatpush.bf16.msrb.mxu0 %v1757_v19  ;;  %v1654_v14 = vld [vmem:[#allocation5 + $0x138] sm:$0xf0]  ;;  %v1582_v19 = vld [vmem:[#allocation5 + $0xa8] sm:$0xf0]  ;;  %v1777_v45 = vor.u32 %v2213_v38, %v1774_v39  ;;  %v2211_v52 = vld [vmem:[#allocation5 + $0x214] sm:$0xf] }
  0x57   :  { %902 = vmatpush.bf16.msrb.mxu1 %v1821_v21  ;;  %v2181_v21 = vld [vmem:[#allocation5 + $0x124] sm:$0xf]  ;;  %v1657_v22 = vor.u32 %v2183_v11, %v1654_v14  ;;  %v1585_v29 = vor.u32 %v2165_v18, %v1582_v19  ;;  %v1630_v51 = vld [vmem:[#allocation5 + $0x108] sm:$0xf0]  ;;  %v1766_v54 = vld [vmem:[#allocation5 + $0x218] sm:$0xf0] }
  0x58   :  { %916 = vmatpush.bf16.msrb.mxu2 %v1885_v25  ;;  %v1782_v25 = vld [vmem:[#allocation5 + $0x238] sm:$0xf0]  ;;  %v2255_v57 = vld [vmem:[#allocation5 + $0x374] sm:$0xf]  ;;  %v1769_v63 = vor.u32 %v2211_v52, %v1766_v54  ;;  %v1633_v0 = vor.u32 %v2177_v48, %v1630_v51  ;;  %v2209_v2 = vld [vmem:[#allocation5 + $0x204] sm:$0xf] }
  0x59   :  { %889 = vmatmul.bf16.vlgmr.msrb.gmra.mxu0 %v2555_v35  ;;  %v1942_v58 = vld [vmem:[#allocation5 + $0x378] sm:$0xf0]  ;;  %v1758_v3 = vld [vmem:[#allocation5 + $0x208] sm:$0xf0]  ;;  %v2237_v6 = vld [vmem:[#allocation5 + $0x2e4] sm:$0xf] }
  0x5a   :  { %937 = vmatpush.bf16.msra.mxu0 %v1625_v26  ;;  %903 = vmatmul.bf16.vlgmr.msrb.gmra.mxu1 %v2557_v36  ;;  %v1646_v26 = vld [vmem:[#allocation5 + $0x128] sm:$0xf0]  ;;  %v1761_v11 = vor.u32 %v2209_v2, %v1758_v3  ;;  %v2235_v14 = vld [vmem:[#allocation5 + $0x2d4] sm:$0xf]  ;;  %v1862_v15 = vld [vmem:[#allocation5 + $0x2d8] sm:$0xf0] }
  0x5b   :  { %951 = vmatpush.bf16.msra.mxu1 %v1689_v30  ;;  %917 = vmatmul.bf16.vlgmr.msrb.gmra.mxu2 %v2559_v40  ;;  %v1785_v30 = vor.u32 %v2215_v24, %v1782_v25  ;;  %v1649_v33 = vor.u32 %v2181_v21, %v1646_v26  ;;  %v1870_v7 = vld [vmem:[#allocation5 + $0x2e8] sm:$0xf0]  ;;  %v2251_v16 = vld [vmem:[#allocation5 + $0x354] sm:$0xf]  ;;  %v2233_v19 = vld [vmem:[#allocation5 + $0x2c4] sm:$0xf] }
  0x5c   :  { %965 = vmatpush.bf16.msra.mxu2 %v1753_v31  ;;  %930 = vmatpush.bf16.msrb.mxu3 %v1505_v41  ;;  %v2163_v31 = vld [vmem:[#allocation5 + $0x94] sm:$0xf]  ;;  %v1638_v41 = vld [vmem:[#allocation5 + $0x118] sm:$0xf0]  ;;  %v1854_v21 = vld [vmem:[#allocation5 + $0x2c8] sm:$0xf0] }
  0x5d   :  { %v1577_v44 = vor.u32 %v2163_v31, %v1574_v32  ;;  %v1641_v49 = vor.u32 %v2179_v37, %v1638_v41  ;;  %v1857_v24 = vor.u32 %v2233_v19, %v1854_v21  ;;  %v2231_v25 = vld [vmem:[#allocation5 + $0x2b4] sm:$0xf]  ;;  %v1846_v26 = vld [vmem:[#allocation5 + $0x2b8] sm:$0xf0]  ;;  %v2245_v31 = vld [vmem:[#allocation5 + $0x324] sm:$0xf] }
  0x5e   :  { %938 = vmatpush.bf16.msra.mxu0 %v1617_v42  ;;  %v2195_v42 = vld [vmem:[#allocation5 + $0x194] sm:$0xf]  ;;  %v1849_v28 = vor.u32 %v2231_v25, %v1846_v26  ;;  %v1902_v32 = vld [vmem:[#allocation5 + $0x328] sm:$0xf0]  ;;  %v1830_v37 = vld [vmem:[#allocation5 + $0x298] sm:$0xf0] }
  0x5f   :  { %952 = vmatpush.bf16.msra.mxu1 %v1681_v46  ;;  %931 = vmatmul.bf16.vlgmr.msrb.gmra.mxu3 %v2543_v53  ;;  %v1793_v53 = vor.u32 %v2217_v12, %v1790_v13  ;;  %v2161_v46 = vld [vmem:[#allocation5 + $0x84] sm:$0xf]  ;;  %v1873_v12 = vor.u32 %v2237_v6, %v1870_v7  ;;  %v2247_v27 = vld [vmem:[#allocation5 + $0x334] sm:$0xf]  ;;  %v1894_v39 = vld [vmem:[#allocation5 + $0x318] sm:$0xf0] }
  0x60   :  { %979 = vmatpush.bf16.msra.mxu3 %v1817_v43  ;;  %966 = vmatpush.bf16.msra.mxu2 %v1745_v47  ;;  %v1702_v43 = vld [vmem:[#allocation5 + $0x198] sm:$0xf0]  ;;  %v1566_v47 = vld [vmem:[#allocation5 + $0x88] sm:$0xf0]  ;;  %v2243_v38 = vld [vmem:[#allocation5 + $0x314] sm:$0xf] }
  0x61   :  { %v1705_v50 = vor.u32 %v2195_v42, %v1702_v43  ;;  %v1569_v62 = vor.u32 %v2161_v46, %v1566_v47  ;;  %v1897_v42 = vor.u32 %v2243_v38, %v1894_v39  ;;  %v2225_v43 = vld [vmem:[#allocation5 + $0x284] sm:$0xf]  ;;  %v1886_v46 = vld [vmem:[#allocation5 + $0x308] sm:$0xf0]  ;;  %v2271_v51 = vld [vmem:[#allocation8 + $0x74] sm:$0xf] }
  0x62   :  { %939 = vmatpush.bf16.msra.mxu0 %v1609_v55  ;;  %v2239_v55 = vld [vmem:[#allocation5 + $0x2f4] sm:$0xf]  ;;  %v2006_v54 = vld [vmem:[#allocation8 + $0x78] sm:$0xf0]  ;;  %v1980_v3 = vld [vmem:[#allocation8 + $0x40] sm:$0xf] }
  0x63   :  { %953 = vmatpush.bf16.msra.mxu1 %v1673_v59  ;;  %v2193_v59 = vld [vmem:[#allocation5 + $0x184] sm:$0xf]  ;;  %v1982_v7 = vld [vmem:[#allocation8 + $0x48] sm:$0xf0]  ;;  %s2481_s30 = smov [#allocation11]   ;;  %s1455_s13 = sshll.u32 %s2594_s7, 4  ;;  %s1456_s13 = int_to_ptr.hbm [resolvable:$true] %s1455_s13 }
  0x64   :  { %980 = vmatpush.bf16.msra.mxu3 %v1809_v56  ;;  %967 = vmatpush.bf16.msra.mxu2 %v1737_v60  ;;  %v1878_v56 = vld [vmem:[#allocation5 + $0x2f8] sm:$0xf0]  ;;  %v1694_v60 = vld [vmem:[#allocation5 + $0x188] sm:$0xf0]  ;;  %s1453_s8 = sshll.u32 %s2481_s30, 4  ;;  %s1454_s8 = int_to_ptr.vmem [resolvable:$true] %s1453_s8 }
  0x65   :  { %v1881_v1 = vor.u32 %v2239_v55, %v1878_v56  ;;  %v2009_v55 = vor.u32 %v2271_v51, %v2006_v54  ;;  %v1996_v56 = vld [vmem:[#allocation8 + $0x60] sm:$0xf]  ;;  %v1966_v19 = vld [vmem:[#allocation8 + $0x28] sm:$0xf0] }
  0x66   :  { %940 = vmatpush.bf16.msra.mxu0 %v1601_v4  ;;  %v1945_v4 = vor.u32 %v2255_v57, %v1942_v58  ;;  %v2270_v57 = vld [vmem:[#allocation8 + $0x64] sm:$0xf0]  ;;  %v2269_v58 = vld [vmem:[#allocation8 + $0x64] sm:$0xf] }
  0x67   :  { %954 = vmatpush.bf16.msra.mxu1 %v1665_v9  ;;  %v2253_v9 = vld [vmem:[#allocation5 + $0x364] sm:$0xf] }
  0x68   :  { %981 = vmatpush.bf16.msra.mxu3 %v1801_v5  ;;  %968 = vmatpush.bf16.msra.mxu2 %v1729_v10  ;;  %v1697_v5 = vor.u32 %v2193_v59, %v1694_v60  ;;  %v1934_v10 = vld [vmem:[#allocation5 + $0x368] sm:$0xf0]  ;;  %v1997_v59 = vor.u32 %v2270_v57, %v1996_v56  ;;  %v2068_v57 = vld [vmem:[#allocation8 + $0xf0] sm:$0xf] }
  0x69   :  { %v1937_v13 = vor.u32 %v2253_v9, %v1934_v10  ;;  %v1998_v60 = vld [vmem:[#allocation8 + $0x68] sm:$0xf0]  ;;  %v1972_v10 = vld [vmem:[#allocation8 + $0x30] sm:$0xf] }
  0x6a   :  { %941 = vmatpush.bf16.msra.mxu0 %v1593_v17  ;;  %v1926_v17 = vld [vmem:[#allocation5 + $0x358] sm:$0xf0] }
  0x6b   :  { %955 = vmatpush.bf16.msra.mxu1 %v1657_v22  ;;  %v1929_v18 = vor.u32 %v2251_v16, %v1926_v17  ;;  %v2249_v22 = vld [vmem:[#allocation5 + $0x344] sm:$0xf]  ;;  %v2262_v17 = vld [vmem:[#allocation8 + $0x24] sm:$0xf0] }
  0x6c   :  { %982 = vmatpush.bf16.msra.mxu3 %v1793_v53  ;;  %969 = vmatpush.bf16.msra.mxu2 %v1721_v23  ;;  %v1865_v53 = vor.u32 %v2235_v14, %v1862_v15  ;;  %v1918_v23 = vld [vmem:[#allocation5 + $0x348] sm:$0xf0]  ;;  %v1974_v14 = vld [vmem:[#allocation8 + $0x38] sm:$0xf0]  ;;  %v1964_v16 = vld [vmem:[#allocation8 + $0x20] sm:$0xf] }
  0x6e   :  { %942 = vmatpush.bf16.msra.mxu0 %v1585_v29  ;;  %v2229_v29 = vld [vmem:[#allocation5 + $0x2a4] sm:$0xf] }
  0x6f   :  { %956 = vmatpush.bf16.msra.mxu1 %v1649_v33  ;;  %v1905_v33 = vor.u32 %v2245_v31, %v1902_v32  ;;  %v1950_v32 = vld [vmem:[#allocation8 + $0x8] sm:$0xf0] }
  0x70   :  { %983 = vmatpush.bf16.msra.mxu3 %v1785_v30  ;;  %970 = vmatpush.bf16.msra.mxu2 %v1713_v34  ;;  %v1838_v30 = vld [vmem:[#allocation5 + $0x2a8] sm:$0xf0]  ;;  %v2227_v34 = vld [vmem:[#allocation5 + $0x294] sm:$0xf] }
  0x71   :  { %v1833_v41 = vor.u32 %v2227_v34, %v1830_v37 }
  0x72   :  { %943 = vmatpush.bf16.msra.mxu0 %v1577_v44  ;;  %v1822_v44 = vld [vmem:[#allocation5 + $0x288] sm:$0xf0] }
  0x73   :  { %957 = vmatpush.bf16.msra.mxu1 %v1641_v49  ;;  %v1825_v47 = vor.u32 %v2225_v43, %v1822_v44  ;;  %v2004_v49 = vld [vmem:[#allocation8 + $0x70] sm:$0xf] }
  0x74   :  { %984 = vmatpush.bf16.msra.mxu3 %v1777_v45  ;;  %971 = vmatpush.bf16.msra.mxu2 %v1705_v50  ;;  %v2241_v45 = vld [vmem:[#allocation5 + $0x304] sm:$0xf]  ;;  %v2272_v50 = vld [vmem:[#allocation8 + $0x74] sm:$0xf0] }
  0x75   :  { %v1889_v48 = vor.u32 %v2241_v45, %v1886_v46  ;;  %v2005_v52 = vor.u32 %v2272_v50, %v2004_v49 }
  0x76   :  { %944 = vmatpush.bf16.msra.mxu0 %v1569_v62  ;;  %v2001_v62 = vor.u32 %v2269_v58, %v1998_v60  ;;  %v2288_v58 = vld [vmem:[#allocation8 + $0xf4] sm:$0xf0] }
  0x77   :  { %958 = vmatpush.bf16.msra.mxu1 %v1633_v0  ;;  %v2268_v0 = vld [vmem:[#allocation8 + $0x54] sm:$0xf0]  ;;  %v2069_v60 = vor.u32 %v2288_v58, %v2068_v57 }
  0x78   :  { %985 = vmatpush.bf16.msra.mxu3 %v1769_v63  ;;  %972 = vmatpush.bf16.msra.mxu2 %v1697_v5  ;;  %v1988_v63 = vld [vmem:[#allocation8 + $0x50] sm:$0xf]  ;;  %v2265_v5 = vld [vmem:[#allocation8 + $0x44] sm:$0xf] }
  0x79   :  { %945 = vmatmul.bf16.vlgmr.msra.gmra.mxu0 %v2549_v8  ;;  %v1921_v8 = vor.u32 %v2249_v22, %v1918_v23  ;;  %v1985_v9 = vor.u32 %v2265_v5, %v1982_v7  ;;  %v1956_v23 = vld [vmem:[#allocation8 + $0x10] sm:$0xf]  ;;  %v2285_v5 = vld [vmem:[#allocation8 + $0xe4] sm:$0xf] }
  0x7a   :  { %993 = vmatpush.bf16.msrb.mxu0 %v1881_v1  ;;  %959 = vmatmul.bf16.vlgmr.msra.gmra.mxu1 %v2545_v61  ;;  %v1910_v61 = vld [vmem:[#allocation5 + $0x338] sm:$0xf0] }
  0x7b   :  { %1007 = vmatpush.bf16.msrb.mxu1 %v1945_v4  ;;  %973 = vmatmul.bf16.vlgmr.msra.gmra.mxu2 %v2552_v20  ;;  %v1913_v20 = vor.u32 %v2247_v27, %v1910_v61  ;;  %v1990_v1 = vld [vmem:[#allocation8 + $0x58] sm:$0xf0]  ;;  %v2266_v4 = vld [vmem:[#allocation8 + $0x44] sm:$0xf0] }
  0x7c   :  { %986 = vmatpush.bf16.msra.mxu3 %v1761_v11  ;;  %1225 = vmatpush.bf16.msrb.mxu2 %v2005_v52  ;;  %v1981_v6 = vor.u32 %v2266_v4, %v1980_v3  ;;  %v2264_v11 = vld [vmem:[#allocation8 + $0x34] sm:$0xf0]  ;;  %v1958_v27 = vld [vmem:[#allocation8 + $0x18] sm:$0xf0]  ;;  %v2060_v3 = vld [vmem:[#allocation8 + $0xe0] sm:$0xf] }
  0x7d   :  { %v2286_v4 = vld [vmem:[#allocation8 + $0xe4] sm:$0xf0] }
  0x7e   :  { %994 = vmatpush.bf16.msrb.mxu0 %v1873_v12  ;;  %v2263_v12 = vld [vmem:[#allocation8 + $0x34] sm:$0xf]  ;;  %v2061_v7 = vor.u32 %v2286_v4, %v2060_v3 }
  0x7f   :  { %1008 = vmatpush.bf16.msrb.mxu1 %v1937_v13  ;;  %987 = vmatmul.bf16.vlgmr.msra.gmra.mxu3 %v2555_v35  ;;  %v1841_v35 = vor.u32 %v2229_v29, %v1838_v30  ;;  %v1973_v13 = vor.u32 %v2264_v11, %v1972_v10  ;;  %v1977_v15 = vor.u32 %v2263_v12, %v1974_v14  ;;  %v2258_v29 = vld [vmem:[#allocation8 + $0x4] sm:$0xf0]  ;;  %v2257_v30 = vld [vmem:[#allocation8 + $0x4] sm:$0xf]  ;;  %v2052_v12 = vld [vmem:[#allocation8 + $0xd0] sm:$0xf] }
  0x80   :  { %1226 = vmatpush.bf16.msrb.mxu2 %v1997_v59  ;;  %v2287_v59 = vld [vmem:[#allocation8 + $0xf4] sm:$0xf]  ;;  %1239 = vmatpush.bf16.msrb.mxu3 %v2069_v60 }
  0x81   :  { %v2283_v14 = vld [vmem:[#allocation8 + $0xd4] sm:$0xf] }
  0x82   :  { %995 = vmatpush.bf16.msrb.mxu0 %v1865_v53  ;;  %v2261_v53 = vld [vmem:[#allocation8 + $0x24] sm:$0xf] }
  0x83   :  { %1009 = vmatpush.bf16.msrb.mxu1 %v1929_v18  ;;  %v1965_v18 = vor.u32 %v2262_v17, %v1964_v16  ;;  %v1969_v21 = vor.u32 %v2261_v53, %v1966_v19  ;;  %v2054_v16 = vld [vmem:[#allocation8 + $0xd8] sm:$0xf0]  ;;  %v2282_v19 = vld [vmem:[#allocation8 + $0xc4] sm:$0xf0] }
  0x84   :  { %1240 = vmatpush.bf16.msrb.mxu3 %v2061_v7 }
  0x86   :  { %996 = vmatpush.bf16.msrb.mxu0 %v1857_v24  ;;  %v2260_v24 = vld [vmem:[#allocation8 + $0x14] sm:$0xf0] }
  0x87   :  { %1010 = vmatpush.bf16.msrb.mxu1 %v1921_v8  ;;  %v2259_v8 = vld [vmem:[#allocation8 + $0x14] sm:$0xf]  ;;  %v1957_v26 = vor.u32 %v2260_v24, %v1956_v23  ;;  %v2281_v23 = vld [vmem:[#allocation8 + $0xc4] sm:$0xf]  ;;  %v2046_v24 = vld [vmem:[#allocation8 + $0xc8] sm:$0xf0] }
  0x88   :  { %v1961_v61 = vor.u32 %v2259_v8, %v1958_v27  ;;  %v2280_v27 = vld [vmem:[#allocation8 + $0xb4] sm:$0xf0] }
  0x8a   :  { %997 = vmatpush.bf16.msrb.mxu0 %v1849_v28  ;;  %v2571_v28 = vld [vmem:[#allocation7] sm:$0x3] }
  0x8b   :  { %1011 = vmatpush.bf16.msrb.mxu1 %v1913_v20  ;;  %v1948_v20 = vld [vmem:[#allocation8] sm:$0xf] }
  0x8c   :  { %v1949_v31 = vor.u32 %v2258_v29, %v1948_v20  ;;  %v2038_v29 = vld [vmem:[#allocation8 + $0xb8] sm:$0xf0] }
  0x8e   :  { %998 = vmatpush.bf16.msrb.mxu0 %v1841_v35  ;;  %v225_v35 = vperm.slane %v2571_v28, 0 }
  0x8f   :  { %1012 = vmatpush.bf16.msrb.mxu1 %v1905_v33  ;;  %v1953_v33 = vor.u32 %v2257_v30, %v1950_v32  ;;  %v2278_v32 = vld [vmem:[#allocation8 + $0xa4] sm:$0xf0] }
  0x92   :  { %999 = vmatpush.bf16.msrb.mxu0 %v1833_v41 }
  0x93   :  { %1013 = vmatpush.bf16.msrb.mxu1 %v1897_v42 }
  0x96   :  { %1000 = vmatpush.bf16.msrb.mxu0 %v1825_v47 }
  0x97   :  { %1014 = vmatpush.bf16.msrb.mxu1 %v1889_v48 }
  0x99   :  { %1001 = vmatmul.bf16.vlgmr.msrb.gmra.mxu0 %v2557_v36  ;;  %v2267_v36 = vld [vmem:[#allocation8 + $0x54] sm:$0xf] }
  0x9a   :  { %1015 = vmatmul.bf16.vlgmr.msrb.gmra.mxu1 %v2559_v40  ;;  %1253 = vmatpush.bf16.msra.mxu0 %v2009_v55  ;;  %v1989_v40 = vor.u32 %v2268_v0, %v1988_v63  ;;  %v1993_v2 = vor.u32 %v2267_v36, %v1990_v1 }
  0x9c   :  { %1227 = vmatpush.bf16.msrb.mxu2 %v1989_v40 }
  0x9e   :  { %1254 = vmatpush.bf16.msra.mxu0 %v2001_v62  ;;  %v2070_v62 = vld [vmem:[#allocation8 + $0xf8] sm:$0xf0] }
  0x9f   :  { %v2073_v36 = vor.u32 %v2287_v59, %v2070_v62 }
  0xa0   :  { %1228 = vmatpush.bf16.msrb.mxu2 %v1981_v6 }
  0xa1   :  { %1267 = vmatpush.bf16.msra.mxu1 %v2073_v36 }
  0xa2   :  { %1255 = vmatpush.bf16.msra.mxu0 %v1993_v2 }
  0xa4   :  { %1229 = vmatpush.bf16.msrb.mxu2 %v1973_v13  ;;  %v2284_v13 = vld [vmem:[#allocation8 + $0xd4] sm:$0xf0] }
  0xa6   :  { %1256 = vmatpush.bf16.msra.mxu0 %v1985_v9  ;;  %v2062_v9 = vld [vmem:[#allocation8 + $0xe8] sm:$0xf0] }
  0xa7   :  { %v2065_v11 = vor.u32 %v2285_v5, %v2062_v9 }
  0xa8   :  { %1230 = vmatpush.bf16.msrb.mxu2 %v1965_v18  ;;  %v2044_v18 = vld [vmem:[#allocation8 + $0xc0] sm:$0xf] }
  0xa9   :  { %1268 = vmatpush.bf16.msra.mxu1 %v2065_v11  ;;  %v2045_v8 = vor.u32 %v2282_v19, %v2044_v18  ;;  %v2304_v18 = vld [vmem:[#allocation10 + $0x78] sm:$0xff] }
  0xaa   :  { %1257 = vmatpush.bf16.msra.mxu0 %v1977_v15  ;;  %v2053_v15 = vor.u32 %v2284_v13, %v2052_v12  ;;  %v2296_v19 = vld [vmem:[#allocation10 + $0x38] sm:$0xff] }
  0xac   :  { %1231 = vmatpush.bf16.msrb.mxu2 %v1957_v26  ;;  %1241 = vmatpush.bf16.msrb.mxu3 %v2053_v15  ;;  %v2036_v26 = vld [vmem:[#allocation8 + $0xb0] sm:$0xf] }
  0xad   :  { %v2037_v20 = vor.u32 %v2280_v27, %v2036_v26  ;;  %v2293_v26 = vld [vmem:[#allocation10 + $0x20] sm:$0xff]  ;;  %v2299_v27 = vld [vmem:[#allocation10 + $0x50] sm:$0xff] }
  0xae   :  { %1258 = vmatpush.bf16.msra.mxu0 %v1969_v21  ;;  %v2057_v21 = vor.u32 %v2283_v14, %v2054_v16 }
  0xb0   :  { %1232 = vmatpush.bf16.msrb.mxu2 %v1949_v31  ;;  %1269 = vmatpush.bf16.msra.mxu1 %v2057_v21  ;;  %v2028_v31 = vld [vmem:[#allocation8 + $0xa0] sm:$0xf]  ;;  %v2303_v21 = vld [vmem:[#allocation10 + $0x70] sm:$0xff] }
  0xb1   :  { %1242 = vmatpush.bf16.msrb.mxu3 %v2045_v8  ;;  %v2301_v8 = vld [vmem:[#allocation10 + $0x60] sm:$0xff] }
  0xb2   :  { %1259 = vmatpush.bf16.msra.mxu0 %v1961_v61  ;;  %v2279_v61 = vld [vmem:[#allocation8 + $0xb4] sm:$0xf] }
  0xb3   :  { %v2041_v30 = vor.u32 %v2279_v61, %v2038_v29  ;;  %v2292_v61 = vld [vmem:[#allocation10 + $0x18] sm:$0xff]  ;;  %v2291_v29 = vld [vmem:[#allocation10 + $0x10] sm:$0xff] }
  0xb4   :  { %1419 = vmatpush.bf16.msra.mxu2 %v2296_v19 }
  0xb5   :  { %1243 = vmatpush.bf16.msrb.mxu3 %v2037_v20  ;;  %v2298_v20 = vld [vmem:[#allocation10 + $0x48] sm:$0xff] }
  0xb6   :  { %v834_v22 = vpop.f32.mrf.mxu0  ;;  %1260 = vmatpush.bf16.msra.mxu0 %v1953_v33  ;;  %v2029_v33 = vor.u32 %v2278_v32, %v2028_v31  ;;  %v2290_v31 = vld [vmem:[#allocation10 + $0x8] sm:$0xff]  ;;  %v2289_v32 = vld [vmem:[#allocation10] sm:$0xff] }
  0xb7   :  { %v835_v37 = vadd.f32 %v834_v22, %v225_v35 }
  0xb9   :  { %v848_v25 = vpop.f32.mrf.mxu1  ;;  %1244 = vmatpush.bf16.msrb.mxu3 %v2029_v33  ;;  %v1059_v33 = vld [vmem:[%s2591_s4] sm:$0x3] }
  0xba   :  { %v849_v41 = vadd.f32 %v848_v25, %v835_v37  ;;  %v2049_v25 = vor.u32 %v2281_v23, %v2046_v24  ;;  %v2302_v23 = vld [vmem:[#allocation10 + $0x68] sm:$0xff] }
  0xbb   :  { %v2294_v24 = vld [vmem:[#allocation10 + $0x28] sm:$0xff] }
  0xbc   :  { %1270 = vmatpush.bf16.msra.mxu1 %v2049_v25  ;;  %v2300_v25 = vld [vmem:[#allocation10 + $0x58] sm:$0xff] }
  0xbe   :  { %v862_v34 = vpop.f32.mrf.mxu2  ;;  %v836_v38 = vpop.f32.mrf.mxu0 }
  0xbf   :  { %v837_v43 = vadd.f32 %v836_v38, %v225_v35  ;;  %v863_v45 = vadd.f32 %v862_v34, %v849_v41  ;;  %v2277_v35 = vld [vmem:[#allocation8 + $0xa4] sm:$0xf]  ;;  %v2030_v34 = vld [vmem:[#allocation8 + $0xa8] sm:$0xf0]  ;;  %v2276_v41 = vld [vmem:[#allocation8 + $0x94] sm:$0xf0] }
  0xc0   :  { %v876_v42 = vpop.f32.mrf.mxu3  ;;  %1271 = vmatpush.bf16.msra.mxu1 %v2041_v30  ;;  %v2033_v38 = vor.u32 %v2277_v35, %v2030_v34  ;;  %v2297_v30 = vld [vmem:[#allocation10 + $0x40] sm:$0xff] }
  0xc1   :  { %v850_v39 = vpop.f32.mrf.mxu1  ;;  %v877_v49 = vadd.f32 %v876_v42, %v863_v45  ;;  %v2275_v42 = vld [vmem:[#allocation8 + $0x94] sm:$0xf] }
  0xc2   :  { %v851_v46 = vadd.f32 %v850_v39, %v837_v43  ;;  %v2020_v39 = vld [vmem:[#allocation8 + $0x90] sm:$0xf] }
  0xc3   :  { %v2021_v43 = vor.u32 %v2276_v41, %v2020_v39 }
  0xc4   :  { %1272 = vmatpush.bf16.msra.mxu1 %v2033_v38  ;;  %v1062_v38 = vperm.slane %v1059_v33, 1 }
  0xc5   :  { %1245 = vmatpush.bf16.msrb.mxu3 %v2021_v43  ;;  %v1061_v43 = vperm.slane %v1059_v33, 0 }
  0xc6   :  { %v864_v44 = vpop.f32.mrf.mxu2 }
  0xc7   :  { %v865_v50 = vadd.f32 %v864_v44, %v851_v46  ;;  %v2022_v44 = vld [vmem:[#allocation8 + $0x98] sm:$0xf0]  ;;  %v2012_v46 = vld [vmem:[#allocation8 + $0x80] sm:$0xf] }
  0xc8   :  { %v878_v51 = vpop.f32.mrf.mxu3  ;;  %v2025_v45 = vor.u32 %v2275_v42, %v2022_v44 }
  0xc9   :  { %v879_v55 = vadd.f32 %v878_v51, %v865_v50  ;;  %v2014_v50 = vld [vmem:[#allocation8 + $0x88] sm:$0xf0] }
  0xca   :  { %1273 = vmatpush.bf16.msra.mxu1 %v2025_v45 }
  0xd6   :  { %v890_v47 = vpop.f32.mrf.mxu0 }
  0xd7   :  { %v904_v48 = vpop.f32.mrf.mxu1  ;;  %v891_v52 = vadd.f32 %v890_v47, %v877_v49  ;;  %v2274_v47 = vld [vmem:[#allocation8 + $0x84] sm:$0xf0] }
  0xd8   :  { %v2013_v49 = vor.u32 %v2274_v47, %v2012_v46 }
  0xd9   :  { %v905_v63 = vadd.f32 %v904_v48, %v891_v52  ;;  %v2273_v48 = vld [vmem:[#allocation8 + $0x84] sm:$0xf] }
  0xda   :  { %v2017_v52 = vor.u32 %v2273_v48, %v2014_v50  ;;  %1246 = vmatpush.bf16.msrb.mxu3 %v2013_v49 }
  0xdc   :  { %1274 = vmatpush.bf16.msra.mxu1 %v2017_v52 }
  0xde   :  { %v918_v54 = vpop.f32.mrf.mxu2  ;;  %v892_v56 = vpop.f32.mrf.mxu0  ;;  %1433 = vmatpush.bf16.msra.mxu3 %v2304_v18 }
  0xdf   :  { %v893_v0 = vadd.f32 %v892_v56, %v879_v55  ;;  %v906_v40 = vpop.f32.mrf.mxu1  ;;  %v919_v1 = vadd.f32 %v918_v54, %v905_v63  ;;  %v226_v54 = vperm.slane %v2571_v28, 1 }
  0xe1   :  { %v907_v2 = vadd.f32 %v906_v40, %v893_v0  ;;  %v1021_v17 = vmax.f32 %v919_v1, 0.0 }
  0xe2   :  { %v932_v37 = vpop.f32.mrf.mxu3  ;;  %1434 = vmatpush.bf16.msra.mxu3 %v2303_v21 }
  0xe3   :  { %v933_v57 = vadd.f32 %v932_v37, %v226_v54 }
  0xe6   :  { %v920_v6 = vpop.f32.mrf.mxu2  ;;  %1435 = vmatpush.bf16.msra.mxu3 %v2302_v23 }
  0xe7   :  { %v921_v10 = vadd.f32 %v920_v6, %v907_v2 }
  0xe9   :  { %v1023_v53 = vmax.f32 %v921_v10, 0.0 }
  0xea   :  { %v934_v56 = vpop.f32.mrf.mxu3  ;;  %1436 = vmatpush.bf16.msra.mxu3 %v2301_v8 }
  0xeb   :  { %v1025_v22 = vpack.c.bf16 %v1023_v53, %v1021_v17  ;;  %v935_v59 = vadd.f32 %v934_v56, %v226_v54 }
  0xed   :  { %1233 = vmatmul.bf16.vlgmr.msrb.gmra.mxu2 %v1025_v22  ;;  %1261 = vmatmul.bf16.vlgmr.msra.gmra.mxu0 %v1025_v22  ;;  %v2295_v22 = vld [vmem:[#allocation10 + $0x30] sm:$0xff] }
  0xee   :  { %1420 = vmatpush.bf16.msra.mxu2 %v2295_v22  ;;  %1437 = vmatpush.bf16.msra.mxu3 %v2300_v25 }
  0xf2   :  { %1421 = vmatpush.bf16.msra.mxu2 %v2294_v24  ;;  %1438 = vmatpush.bf16.msra.mxu3 %v2299_v27 }
  0xf6   :  { %v946_v51 = vpop.f32.mrf.mxu0  ;;  %1422 = vmatpush.bf16.msra.mxu2 %v2293_v26  ;;  %1439 = vmatpush.bf16.msra.mxu3 %v2298_v20 }
  0xf7   :  { %v960_v55 = vpop.f32.mrf.mxu1  ;;  %v947_v60 = vadd.f32 %v946_v51, %v933_v57 }
  0xf9   :  { %v961_v36 = vadd.f32 %v960_v55, %v947_v60 }
  0xfa   :  { %1423 = vmatpush.bf16.msra.mxu2 %v2292_v61  ;;  %1440 = vmatpush.bf16.msra.mxu3 %v2297_v30 }
  0xfe   :  { %v974_v58 = vpop.f32.mrf.mxu2  ;;  %v948_v62 = vpop.f32.mrf.mxu0  ;;  %1424 = vmatpush.bf16.msra.mxu2 %v2291_v29 }
  0xff   :  { %v962_v63 = vpop.f32.mrf.mxu1  ;;  %v949_v40 = vadd.f32 %v948_v62, %v935_v59  ;;  %v975_v1 = vadd.f32 %v974_v58, %v961_v36  ;;  %v2317_v62 = vld [vmem:[%s2593_s6] ss:$0 sm:$0xff] }
 0x101   :  { %v963_v2 = vadd.f32 %v962_v63, %v949_v40 }
 0x102   :  { %v988_v0 = vpop.f32.mrf.mxu3  ;;  %1425 = vmatpush.bf16.msra.mxu2 %v2290_v31 }
 0x103   :  { %v989_v6 = vadd.f32 %v988_v0, %v975_v1 }
 0x106   :  { %v976_v3 = vpop.f32.mrf.mxu2  ;;  %1426 = vmatpush.bf16.msra.mxu2 %v2289_v32 }
 0x107   :  { %v977_v28 = vadd.f32 %v976_v3, %v963_v2 }
 0x10a   :  { %v990_v7 = vpop.f32.mrf.mxu3 }
 0x10b   :  { %v991_v10 = vadd.f32 %v990_v7, %v977_v28 }
 0x116   :  { %v1002_v4 = vpop.f32.mrf.mxu0 }
 0x117   :  { %v1016_v5 = vpop.f32.mrf.mxu1  ;;  %v1003_v9 = vadd.f32 %v1002_v4, %v989_v6 }
 0x119   :  { %v1017_v12 = vadd.f32 %v1016_v5, %v1003_v9 }
 0x11b   :  { %v1022_v16 = vmax.f32 %v1017_v12, 0.0 }
 0x11e   :  { %v1004_v11 = vpop.f32.mrf.mxu0 }
 0x11f   :  { %v1005_v13 = vadd.f32 %v1004_v11, %v991_v10  ;;  %v1018_v14 = vpop.f32.mrf.mxu1 }
 0x121   :  { %v1019_v15 = vadd.f32 %v1018_v14, %v1005_v13 }
 0x123   :  { %v1024_v17 = vmax.f32 %v1019_v15, 0.0 }
 0x125   :  { %v1026_v53 = vpack.c.bf16 %v1024_v17, %v1022_v16 }
 0x127   :  { %1247 = vmatmul.bf16.vlgmr.msrb.gmra.mxu3 %v1026_v53  ;;  %1275 = vmatmul.bf16.vlgmr.msra.gmra.mxu1 %v1026_v53 }
 0x16a   :  { %v1262_v35 = vpop.f32.mrf.mxu0 }
 0x16b   :  { %v1263_v41 = vadd.f32 %v1262_v35, %v1062_v38 }
 0x170   :  { %v1234_v34 = vpop.f32.mrf.mxu2 }
 0x171   :  { %v1235_v49 = vadd.f32 %v1234_v34, %v1061_v43 }
 0x172   :  { %v1264_v39 = vpop.f32.mrf.mxu0 }
 0x173   :  { %v1265_v44 = vadd.f32 %v1264_v39, %v1062_v38 }
 0x178   :  { %v1236_v48 = vpop.f32.mrf.mxu2 }
 0x179   :  { %v1237_v52 = vadd.f32 %v1236_v48, %v1061_v43 }
 0x1a4   :  { %v1276_v37 = vpop.f32.mrf.mxu1 }
 0x1a5   :  { %v1277_v45 = vadd.f32 %v1276_v37, %v1263_v41 }
 0x1a7   :  { %v1282_v50 = vmax.f32 %v1277_v45, 0.0 }
 0x1aa   :  { %v1248_v42 = vpop.f32.mrf.mxu3 }
 0x1ab   :  { %v1249_v54 = vadd.f32 %v1248_v42, %v1235_v49 }
 0x1ac   :  { %v1278_v46 = vpop.f32.mrf.mxu1 }
 0x1ad   :  { %v1279_v47 = vadd.f32 %v1278_v46, %v1265_v44  ;;  %v1281_v58 = vmax.f32 %v1249_v54, 0.0 }
 0x1af   :  { %v1284_v51 = vmax.f32 %v1279_v47, 0.0 }
 0x1b1   :  { %v1286_v55 = vpack.c.bf16 %v1284_v51, %v1282_v50 }
 0x1b2   :  { %v1250_v56 = vpop.f32.mrf.mxu3 }
 0x1b3   :  { %v1251_v57 = vadd.f32 %v1250_v56, %v1237_v52  ;;  %1441 = vmatmul.bf16.vlgmr.msra.gmra.mxu3 %v1286_v55 }
 0x1b5   :  { %v1283_v59 = vmax.f32 %v1251_v57, 0.0 }
 0x1b7   :  { %v1285_v60 = vpack.c.bf16 %v1283_v59, %v1281_v58 }
 0x1b9   :  { %1427 = vmatmul.bf16.vlgmr.msra.gmra.mxu2 %v1285_v60 }
 0x236   :  { %v1442_v63 = vpop.f32.mrf.mxu3 }
 0x23c   :  { %v1428_v0 = vpop.f32.mrf.mxu2 }
 0x23d   :  { %v1429_v36 = vadd.f32 %v2317_v62, %v1428_v0 }
 0x23e   :  { %v1444_v3 = vpop.f32.mrf.mxu3 }
 0x23f   :  { %v1443_v40 = vadd.f32 %v1442_v63, %v1429_v36 }
 0x241   :  { %1447 = vst [vmem:[#allocation11] sm:$0xff] %v1443_v40 }
 0x244   :  { %v1430_v1 = vpop.f32.mrf.mxu2 }
 0x245   :  { %v1431_v2 = vadd.f32 %v2317_v62, %v1430_v1 }
 0x247   :  { %v1445_v4 = vadd.f32 %v1444_v3, %v1431_v2 }
 0x249   :  { %1448 = vst [vmem:[#allocation11 + $0x8] sm:$0xff] %v1445_v4 }
 0x24a   :  { %1461 = dma.vmem_to_hbm [thread:$0]  %s1454_s8, 256, %s1456_s13, [#allocation4], %s2471_s9, %s2471_s9, %s2472_s10  }
 0x24b   :  { %2468 = dma.done.wait [#allocation4], 256  }
 0x24c   :  { %2469 = vsyncadd [#allocation4], 4294967040 }
 0x24d   :  { %1466 = vsyncpa [#allocation3], 1 }
 0x24e   :  { %1467 = vsyncpa [#allocation6], 1 }
 0x24f   :  { %1468 = vsyncpa [#allocation9], 1 }
 0x250   :  { %1469 = vsyncpa [#allocation4], 1 }

</bundles_post_ra>
